<compile_context>
chip_gen: v5e
topology: v5e:2x2
jax: 0.10.0
libtpu: 0.0.40
codegen_flags: <defaults>
</compile_context>

<pallas_src>
import functools
import math

import jax
import jax.numpy as jnp
from jax.experimental import pallas as pl
from jax.experimental.pallas import tpu as pltpu


def _get_slopes(heads):
    """Same slope schedule as the PyTorch module."""
    def get_slopes_power_of_2(n):
        start = 2 ** (-2 ** (-(math.log2(n) - 3)))
        ratio = start
        return [start * ratio ** i for i in range(n)]

    if math.log2(heads).is_integer():
        return get_slopes_power_of_2(heads)
    closest = 2 ** math.floor(math.log2(heads))
    return (get_slopes_power_of_2(closest)
            + get_slopes_power_of_2(2 * closest)[0::2][:heads - closest])


def _round_up(x, m):
    return ((x + m - 1) // m) * m


def _alibi_kernel(slopes_ref, o_ref, dist_ref, *, qk_offset, heads_per_block):
    """grid = (i_tiles, j_tiles, head_groups); head axis innermost ("arbitrary").

    dist_ref (VMEM scratch) holds the head-invariant distance matrix for the
    current (i_tile, j_tile); it is computed only when head_group == 0 and then
    reused, so each head is one scalar-broadcast multiply + lane-dense store
    (1 vld + 1 vmul + 1 vst per vreg, safely under the HBM store roofline)."""
    it = pl.program_id(0)
    jt = pl.program_id(1)
    hg = pl.program_id(2)
    TI, TJ = dist_ref.shape

    @pl.when(hg == 0)
    def _():
        row = jax.lax.broadcasted_iota(jnp.int32, (TI, TJ), 0) + it * TI
        col = jax.lax.broadcasted_iota(jnp.int32, (TI, TJ), 1) + jt * TJ
        # bias[r, c] = -|c - (r + (j - i))|   (i_arange = arange(j - i, j))
        # int32 -> float32 is exact for any realistic sequence length (< 2^24).
        dist_ref[...] = (-jnp.abs(col - row - qk_offset)).astype(jnp.float32)

    h0 = hg * heads_per_block
    for hh in range(heads_per_block):            # static unroll over head block
        slope = slopes_ref[h0 + hh]              # scalar read from SMEM
        o_ref[hh] = (dist_ref[...] * slope).astype(o_ref.dtype)


def alibi_positional_bias(i, j, heads, total_heads, *,
                          out_dtype=jnp.float32,
                          max_ti=512, max_tj=2048,
                          target_block_bytes=4 * 1024 * 1024):
    """Returns the (total_heads, i, j) alibi bias (PyTorch forward semantics).

    Pass out_dtype=jnp.bfloat16 to halve HBM write traffic (the kernel is
    purely store-bound); validate precision for very long contexts first.
    """
    assert heads <= total_heads
    slopes = jnp.asarray(_get_slopes(heads), dtype=jnp.float32)
    # Slope 0 for "unalibied" heads -> rows of zeros, identical to pad_at_dim.
    slopes_full = jnp.concatenate(
        [slopes, jnp.zeros((total_heads - heads,), jnp.float32)], axis=0)

    itemsize = jnp.dtype(out_dtype).itemsize

    # Lane-dense tiling: TJ multiple of 128, TI multiple of 8.  Ragged (i, j)
    # boundaries are handled by Pallas block clipping -- no padded buffer, no
    # post-kernel slice copy.
    tj = min(_round_up(j, 128), max_tj)
    ti = min(_round_up(i, 8), max_ti)
    grid_i = pl.cdiv(i, ti)
    grid_j = pl.cdiv(j, tj)

    # v7x megacore: with only the i/j axes "parallel", a 1x1 parallel sub-grid
    # would leave one TensorCore idle.  Split the i axis when possible.
    if grid_i * grid_j == 1:
        if ti >= 16:
            ti = _round_up((ti + 1) // 2, 8)
            grid_i = pl.cdiv(i, ti)
        elif tj >= 256:
            tj = _round_up(tj // 2, 128)
            grid_j = pl.cdiv(j, tj)

    # Batch Hb heads per output block to amortize per-grid-step overhead while
    # keeping 2 x output double-buffer + dist scratch within ~12 MiB VMEM
    # (safe under v5e's 16 MiB default scoped limit).
    hb = 1
    for cand in (8, 4, 2):
        if total_heads % cand == 0 and cand * ti * tj * itemsize <= target_block_bytes:
            hb = cand
            break
    grid = (grid_i, grid_j, total_heads // hb)

    kernel = functools.partial(_alibi_kernel, qk_offset=j - i,
                               heads_per_block=hb)

    # TODO(synk): longer term, fuse `-|c - r - (j - i)| * slope` directly into
    # the attention-score kernel; this kernel's cost is 100% HBM writes.
    out = pl.pallas_call(
        kernel,
        out_shape=jax.ShapeDtypeStruct((total_heads, i, j), out_dtype),
        grid_spec=pltpu.PrefetchScalarGridSpec(
            num_scalar_prefetch=1,               # slopes_full -> SMEM
            grid=grid,
            in_specs=[],
            out_specs=pl.BlockSpec(
                (hb, ti, tj),
                lambda it, jt, hg, slopes: (hg, it, jt)),
            scratch_shapes=[pltpu.VMEM((ti, tj), jnp.float32)]),
        compiler_params=pltpu.CompilerParams(
            dimension_semantics=("parallel", "parallel", "arbitrary")),
        cost_estimate=pl.CostEstimate(
            flops=total_heads * i * j,
            transcendentals=0,
            bytes_accessed=total_heads * i * j * itemsize),
    )(slopes_full)
    return out


def _reference(i, j, heads, total_heads):
    """Pure-JAX reference mirroring the PyTorch code path exactly."""
    slopes = jnp.asarray(_get_slopes(heads), dtype=jnp.float32)
    i_ar = jnp.arange(j - i, j)
    j_ar = jnp.arange(j)
    bias = -jnp.abs(j_ar[None, None, :] - i_ar[None, :, None]).astype(jnp.float32)
    bias = bias * slopes[:, None, None]
    return jnp.concatenate(
        [bias, jnp.zeros((total_heads - heads, i, j), jnp.float32)], axis=0)


if __name__ == "__main__":
    # forward() takes only sequence lengths (i, j); no tensor inputs, so the
    # PRNG key is unused beyond construction.
    _ = jax.random.PRNGKey(0)

    cases = [
        (4, 8, 8, 16),     # power-of-2 heads, single ragged tile (j < 128)
        (6, 8, 24, 40),    # non-pow2 heads, ragged i and j, megacore i-split
        (8, 8, 24, 200),   # multi i-tile grid + 8-head blocks + ragged j
    ]
    for heads, total_heads, i, j in cases:
        out = jax.block_until_ready(
            alibi_positional_bias(i, j, heads, total_heads))
        ref = _reference(i, j, heads, total_heads)
        assert out.shape == (total_heads, i, j), out.shape
        assert jnp.allclose(out, ref, atol=1e-6), "f32 mismatch vs reference"

    # bf16 output path (halves HBM write traffic on this store-bound kernel);
    # also exercises multiple head groups reusing the dist scratch.
    heads, total_heads, i, j = 8, 16, 64, 128
    out_bf = jax.block_until_ready(
        alibi_positional_bias(i, j, heads, total_heads,
                              out_dtype=jnp.bfloat16))
    ref = _reference(i, j, heads, total_heads)
    assert out_bf.dtype == jnp.bfloat16 and out_bf.shape == (total_heads, i, j)
    assert jnp.allclose(out_bf.astype(jnp.float32), ref, rtol=1e-2, atol=1e-6), \
        "bf16 mismatch vs reference"

    print("KERNEL_OK")
</pallas_src>

<mosaic_0001>
module attributes {stable_mosaic.version = 11 : i64} {
  func.func @_alibi_kernel(%arg0: i32, %arg1: i32, %arg2: i32, %arg3: memref<8xf32, #tpu.memory_space<smem>>, %arg4: memref<8x8x128xf32, #tpu.memory_space<vmem>>, %arg5: memref<8x128xf32, #tpu.memory_space<vmem>>) attributes {dimension_semantics = [#tpu.dimension_semantics<parallel>, #tpu.dimension_semantics<parallel>, #tpu.dimension_semantics<arbitrary>], iteration_bounds = array<i64: 1, 1, 1>, scalar_prefetch = 1 : i64, scratch_operands = 1 : i64, tpu.core_type = #tpu.core_type<tc>, window_params = [{transform_indices = @transform_0, window_bounds = array<i64: 8, 8, 128>}]} {
    %c0_i32 = arith.constant 0 : i32
    %0 = arith.cmpi eq, %arg2, %c0_i32 : i32
    %1 = arith.extui %0 : i1 to i32
    %c0_i32_0 = arith.constant 0 : i32
    %2 = arith.cmpi ne, %1, %c0_i32_0 : i32
    scf.if %2 {
      %76 = tpu.iota {dimensions = array<i32: 0>} : vector<8x128xi32>
      %c8_i32_34 = arith.constant 8 : i32
      %77 = arith.muli %arg0, %c8_i32_34 : i32
      %78 = vector.broadcast %77 : i32 to vector<8x128xi32>
      %79 = arith.addi %76, %78 : vector<8x128xi32>
      %80 = tpu.iota {dimensions = array<i32: 1>} : vector<8x128xi32>
      %c128_i32 = arith.constant 128 : i32
      %81 = arith.muli %arg1, %c128_i32 : i32
      %82 = vector.broadcast %81 : i32 to vector<8x128xi32>
      %83 = arith.addi %80, %82 : vector<8x128xi32>
      %84 = arith.subi %83, %79 : vector<8x128xi32>
      %c8_i32_35 = arith.constant 8 : i32
      %85 = vector.broadcast %c8_i32_35 : i32 to vector<8x128xi32>
      %86 = arith.subi %84, %85 : vector<8x128xi32>
      %87 = math.absi %86 : vector<8x128xi32>
      %c0_i32_36 = arith.constant 0 : i32
      %88 = vector.broadcast %c0_i32_36 : i32 to vector<8x128xi32>
      %89 = arith.subi %88, %87 : vector<8x128xi32>
      %90 = arith.sitofp %89 : vector<8x128xi32> to vector<8x128xf32>
      %c0_37 = arith.constant 0 : index
      %c0_38 = arith.constant 0 : index
      %91 = vector.load %arg5[%c0_37, %c0_38] : memref<8x128xf32, #tpu.memory_space<vmem>>, vector<8x128xf32>
      tpu.vector_store %arg5[%c0_37, %c0_38], %90 {strides = array<i32>} : memref<8x128xf32, #tpu.memory_space<vmem>>, vector<8x128xf32>,
    } else {
    }
    %c8_i32 = arith.constant 8 : i32
    %3 = arith.muli %arg2, %c8_i32 : i32
    %c0_i32_1 = arith.constant 0 : i32
    %4 = arith.addi %3, %c0_i32_1 : i32
    %5 = arith.index_cast %4 : i32 to index
    %6 = memref.load %arg3[%5] : memref<8xf32, #tpu.memory_space<smem>>
    %c0 = arith.constant 0 : index
    %c0_2 = arith.constant 0 : index
    %7 = vector.load %arg5[%c0, %c0_2] : memref<8x128xf32, #tpu.memory_space<vmem>>, vector<8x128xf32>
    %8 = vector.broadcast %6 : f32 to vector<8x128xf32>
    %9 = arith.mulf %7, %8 : vector<8x128xf32>
    %c0_3 = arith.constant 0 : index
    %c0_4 = arith.constant 0 : index
    %c0_5 = arith.constant 0 : index
    %10 = vector.load %arg4[%c0_3, %c0_4, %c0_5] : memref<8x8x128xf32, #tpu.memory_space<vmem>>, vector<1x8x128xf32>
    %11 = vector.shape_cast %10 : vector<1x8x128xf32> to vector<8x128xf32>
    %12 = vector.shape_cast %9 : vector<8x128xf32> to vector<1x8x128xf32>
    tpu.vector_store %arg4[%c0_3, %c0_4, %c0_5], %12 {strides = array<i32>} : memref<8x8x128xf32, #tpu.memory_space<vmem>>, vector<1x8x128xf32>,
    %c1_i32 = arith.constant 1 : i32
    %13 = arith.addi %3, %c1_i32 : i32
    %14 = arith.index_cast %13 : i32 to index
    %15 = memref.load %arg3[%14] : memref<8xf32, #tpu.memory_space<smem>>
    %c0_6 = arith.constant 0 : index
    %c0_7 = arith.constant 0 : index
    %16 = vector.load %arg5[%c0_6, %c0_7] : memref<8x128xf32, #tpu.memory_space<vmem>>, vector<8x128xf32>
    %17 = vector.broadcast %15 : f32 to vector<8x128xf32>
    %18 = arith.mulf %16, %17 : vector<8x128xf32>
    %c1 = arith.constant 1 : index
    %c0_8 = arith.constant 0 : index
    %c0_9 = arith.constant 0 : index
    %19 = vector.load %arg4[%c1, %c0_8, %c0_9] : memref<8x8x128xf32, #tpu.memory_space<vmem>>, vector<1x8x128xf32>
    %20 = vector.shape_cast %19 : vector<1x8x128xf32> to vector<8x128xf32>
    %21 = vector.shape_cast %18 : vector<8x128xf32> to vector<1x8x128xf32>
    tpu.vector_store %arg4[%c1, %c0_8, %c0_9], %21 {strides = array<i32>} : memref<8x8x128xf32, #tpu.memory_space<vmem>>, vector<1x8x128xf32>,
    %c2_i32 = arith.constant 2 : i32
    %22 = arith.addi %3, %c2_i32 : i32
    %23 = arith.index_cast %22 : i32 to index
    %24 = memref.load %arg3[%23] : memref<8xf32, #tpu.memory_space<smem>>
    %c0_10 = arith.constant 0 : index
    %c0_11 = arith.constant 0 : index
    %25 = vector.load %arg5[%c0_10, %c0_11] : memref<8x128xf32, #tpu.memory_space<vmem>>, vector<8x128xf32>
    %26 = vector.broadcast %24 : f32 to vector<8x128xf32>
    %27 = arith.mulf %25, %26 : vector<8x128xf32>
    %c2 = arith.constant 2 : index
    %c0_12 = arith.constant 0 : index
    %c0_13 = arith.constant 0 : index
    %28 = vector.load %arg4[%c2, %c0_12, %c0_13] : memref<8x8x128xf32, #tpu.memory_space<vmem>>, vector<1x8x128xf32>
    %29 = vector.shape_cast %28 : vector<1x8x128xf32> to vector<8x128xf32>
    %30 = vector.shape_cast %27 : vector<8x128xf32> to vector<1x8x128xf32>
    tpu.vector_store %arg4[%c2, %c0_12, %c0_13], %30 {strides = array<i32>} : memref<8x8x128xf32, #tpu.memory_space<vmem>>, vector<1x8x128xf32>,
    %c3_i32 = arith.constant 3 : i32
    %31 = arith.addi %3, %c3_i32 : i32
    %32 = arith.index_cast %31 : i32 to index
    %33 = memref.load %arg3[%32] : memref<8xf32, #tpu.memory_space<smem>>
    %c0_14 = arith.constant 0 : index
    %c0_15 = arith.constant 0 : index
    %34 = vector.load %arg5[%c0_14, %c0_15] : memref<8x128xf32, #tpu.memory_space<vmem>>, vector<8x128xf32>
    %35 = vector.broadcast %33 : f32 to vector<8x128xf32>
    %36 = arith.mulf %34, %35 : vector<8x128xf32>
    %c3 = arith.constant 3 : index
    %c0_16 = arith.constant 0 : index
    %c0_17 = arith.constant 0 : index
    %37 = vector.load %arg4[%c3, %c0_16, %c0_17] : memref<8x8x128xf32, #tpu.memory_space<vmem>>, vector<1x8x128xf32>
    %38 = vector.shape_cast %37 : vector<1x8x128xf32> to vector<8x128xf32>
    %39 = vector.shape_cast %36 : vector<8x128xf32> to vector<1x8x128xf32>
    tpu.vector_store %arg4[%c3, %c0_16, %c0_17], %39 {strides = array<i32>} : memref<8x8x128xf32, #tpu.memory_space<vmem>>, vector<1x8x128xf32>,
    %c4_i32 = arith.constant 4 : i32
    %40 = arith.addi %3, %c4_i32 : i32
    %41 = arith.index_cast %40 : i32 to index
    %42 = memref.load %arg3[%41] : memref<8xf32, #tpu.memory_space<smem>>
    %c0_18 = arith.constant 0 : index
    %c0_19 = arith.constant 0 : index
    %43 = vector.load %arg5[%c0_18, %c0_19] : memref<8x128xf32, #tpu.memory_space<vmem>>, vector<8x128xf32>
    %44 = vector.broadcast %42 : f32 to vector<8x128xf32>
    %45 = arith.mulf %43, %44 : vector<8x128xf32>
    %c4 = arith.constant 4 : index
    %c0_20 = arith.constant 0 : index
    %c0_21 = arith.constant 0 : index
    %46 = vector.load %arg4[%c4, %c0_20, %c0_21] : memref<8x8x128xf32, #tpu.memory_space<vmem>>, vector<1x8x128xf32>
    %47 = vector.shape_cast %46 : vector<1x8x128xf32> to vector<8x128xf32>
    %48 = vector.shape_cast %45 : vector<8x128xf32> to vector<1x8x128xf32>
    tpu.vector_store %arg4[%c4, %c0_20, %c0_21], %48 {strides = array<i32>} : memref<8x8x128xf32, #tpu.memory_space<vmem>>, vector<1x8x128xf32>,
    %c5_i32 = arith.constant 5 : i32
    %49 = arith.addi %3, %c5_i32 : i32
    %50 = arith.index_cast %49 : i32 to index
    %51 = memref.load %arg3[%50] : memref<8xf32, #tpu.memory_space<smem>>
    %c0_22 = arith.constant 0 : index
    %c0_23 = arith.constant 0 : index
    %52 = vector.load %arg5[%c0_22, %c0_23] : memref<8x128xf32, #tpu.memory_space<vmem>>, vector<8x128xf32>
    %53 = vector.broadcast %51 : f32 to vector<8x128xf32>
    %54 = arith.mulf %52, %53 : vector<8x128xf32>
    %c5 = arith.constant 5 : index
    %c0_24 = arith.constant 0 : index
    %c0_25 = arith.constant 0 : index
    %55 = vector.load %arg4[%c5, %c0_24, %c0_25] : memref<8x8x128xf32, #tpu.memory_space<vmem>>, vector<1x8x128xf32>
    %56 = vector.shape_cast %55 : vector<1x8x128xf32> to vector<8x128xf32>
    %57 = vector.shape_cast %54 : vector<8x128xf32> to vector<1x8x128xf32>
    tpu.vector_store %arg4[%c5, %c0_24, %c0_25], %57 {strides = array<i32>} : memref<8x8x128xf32, #tpu.memory_space<vmem>>, vector<1x8x128xf32>,
    %c6_i32 = arith.constant 6 : i32
    %58 = arith.addi %3, %c6_i32 : i32
    %59 = arith.index_cast %58 : i32 to index
    %60 = memref.load %arg3[%59] : memref<8xf32, #tpu.memory_space<smem>>
    %c0_26 = arith.constant 0 : index
    %c0_27 = arith.constant 0 : index
    %61 = vector.load %arg5[%c0_26, %c0_27] : memref<8x128xf32, #tpu.memory_space<vmem>>, vector<8x128xf32>
    %62 = vector.broadcast %60 : f32 to vector<8x128xf32>
    %63 = arith.mulf %61, %62 : vector<8x128xf32>
    %c6 = arith.constant 6 : index
    %c0_28 = arith.constant 0 : index
    %c0_29 = arith.constant 0 : index
    %64 = vector.load %arg4[%c6, %c0_28, %c0_29] : memref<8x8x128xf32, #tpu.memory_space<vmem>>, vector<1x8x128xf32>
    %65 = vector.shape_cast %64 : vector<1x8x128xf32> to vector<8x128xf32>
    %66 = vector.shape_cast %63 : vector<8x128xf32> to vector<1x8x128xf32>
    tpu.vector_store %arg4[%c6, %c0_28, %c0_29], %66 {strides = array<i32>} : memref<8x8x128xf32, #tpu.memory_space<vmem>>, vector<1x8x128xf32>,
    %c7_i32 = arith.constant 7 : i32
    %67 = arith.addi %3, %c7_i32 : i32
    %68 = arith.index_cast %67 : i32 to index
    %69 = memref.load %arg3[%68] : memref<8xf32, #tpu.memory_space<smem>>
    %c0_30 = arith.constant 0 : index
    %c0_31 = arith.constant 0 : index
    %70 = vector.load %arg5[%c0_30, %c0_31] : memref<8x128xf32, #tpu.memory_space<vmem>>, vector<8x128xf32>
    %71 = vector.broadcast %69 : f32 to vector<8x128xf32>
    %72 = arith.mulf %70, %71 : vector<8x128xf32>
    %c7 = arith.constant 7 : index
    %c0_32 = arith.constant 0 : index
    %c0_33 = arith.constant 0 : index
    %73 = vector.load %arg4[%c7, %c0_32, %c0_33] : memref<8x8x128xf32, #tpu.memory_space<vmem>>, vector<1x8x128xf32>
    %74 = vector.shape_cast %73 : vector<1x8x128xf32> to vector<8x128xf32>
    %75 = vector.shape_cast %72 : vector<8x128xf32> to vector<1x8x128xf32>
    tpu.vector_store %arg4[%c7, %c0_32, %c0_33], %75 {strides = array<i32>} : memref<8x8x128xf32, #tpu.memory_space<vmem>>, vector<1x8x128xf32>,
    return
  }
  func.func @transform_0(%arg0: i32, %arg1: i32, %arg2: i32, %arg3: memref<8xf32, #tpu.memory_space<smem>>) -> (i32, i32, i32) {
    %c0_i32 = arith.constant 0 : i32
    return %arg2, %arg0, %arg1 : i32, i32, i32
  }
}

</mosaic_0001>

<bundles_post_ra>
// kernel: tpu_custom_call.1
= control target key start
LH: loop header
LB: loop body
LE: loop exit
PB: predicated region body
PF: predicated region fallthrough
CT: control target
= control target key end

     0   :  { %s162_s9 = smov [#allocation4]   ;;  %s182_s0 = inlined_call_operand.hbm [shape: f32[8], index: 0, kind: input, shape index: {}]   ;;  %s183_s1 = inlined_call_operand.hbm [shape: f32[8,8,16], index: 1, kind: output, shape index: {}]  }
   0x1   :  { %s7_s8 = sshll.u32 %s182_s0, 4  ;;  %s8_s8 = int_to_ptr.hbm [resolvable:$true] %s7_s8 }
   0x2   :  { %10 = dma.hbm_to_smem %s8_s8, 16, %s162_s9, [#allocation3] }
   0x3   :  { %158 = dma.done.wait [#allocation3], 16 }
   0x4   :  { %159 = vsyncadd [#allocation3], 4294967280 }
   0x5   :  { %13 = sfence }
   0x6   :  { %v19_v0 = vlaneseq }
   0x7   :  { %14 = vsyncpa [#allocation6], 0  ;;  %s38_s10 = sld [smem:[#allocation4]]  ;;  %s163_s17 = smov [#allocation5]  }
   0x8   :  { %v20_v1 = vshrl.u32 %v19_v0, 7  ;;  %v25_v2 = vand.u32 127, %v19_v0  ;;  %s111_s11 = sld [smem:[#allocation4 + $0x1]]  ;;  %s96_s18 = sshll.u32 %s163_s17, 4  ;;  %s97_s18 = int_to_ptr.vmem [resolvable:$true] %s96_s18 }
   0x9   :  { %s112_s12 = sld [smem:[#allocation4 + $0x2]]  ;;  %s98_s21 = sshll.u32 %s183_s1, 4  ;;  %s99_s21 = int_to_ptr.hbm [resolvable:$true] %s98_s21 }
   0xa   :  { %v29_v3 = vsub.s32 %v25_v2, %v20_v1  ;;  %s113_s13 = sld [smem:[#allocation4 + $0x3]]  ;;  %s164_s22 = smov 128  }
   0xb   :  { %s114_s14 = sld [smem:[#allocation4 + $0x4]]  ;;  %s165_s23 = smov 8  }
   0xc   :  { %v110_v4 = vadd.s32 4294967288, %v29_v3  ;;  %s115_s15 = sld [smem:[#allocation4 + $0x5]] }
   0xd   :  { %s116_s0 = sld [smem:[#allocation4 + $0x6]]  ;;  %v40_v8 = vstv %s38_s10 }
   0xe   :  { %vm31_vm0 = vcmp.lt.s32.totalorder %v110_v4, 0  ;;  %v32_v5 = vsub.s32 0, %v110_v4  ;;  %s117_s16 = sld [smem:[#allocation4 + $0x7]]  ;;  %v46_v9 = vstv %s111_s11 }
   0xf   :  { %v53_v10 = vstv %s112_s12 }
  0x10   :  { %v33_v6 = vsel %vm31_vm0, %v32_v5, %v110_v4  ;;  %v60_v12 = vstv %s113_s13 }
  0x11   :  { %v34_v7 = vsub.s32 0, %v33_v6  ;;  %v67_v13 = vstv %s114_s14 }
  0x12   :  { %v74_v17 = vstv %s115_s15 }
  0x13   :  { %v35_v11 = vcvt.s32.f32 %v34_v7  ;;  %v81_v19 = vstv %s116_s0 }
  0x14   :  { %v88_v21 = vstv %s117_s16 }
  0x15   :  { %v41_v14 = vmul.f32 %v40_v8, %v35_v11  ;;  %v47_v15 = vmul.f32 %v46_v9, %v35_v11  ;;  %v54_v16 = vmul.f32 %v53_v10, %v35_v11  ;;  %v61_v18 = vmul.f32 %v60_v12, %v35_v11 }
  0x16   :  { %v68_v20 = vmul.f32 %v67_v13, %v35_v11  ;;  %v75_v22 = vmul.f32 %v74_v17, %v35_v11  ;;  %v82_v23 = vmul.f32 %v81_v19, %v35_v11  ;;  %v89_v24 = vmul.f32 %v88_v21, %v35_v11 }
  0x17   :  { %42 = vst [vmem:[#allocation5] sm:$0xff] %v41_v14 }
  0x18   :  { %49 = vst [vmem:[#allocation5 + $0x8] sm:$0xff] %v47_v15 }
  0x19   :  { %56 = vst [vmem:[#allocation5 + $0x10] sm:$0xff] %v54_v16 }
  0x1a   :  { %63 = vst [vmem:[#allocation5 + $0x18] sm:$0xff] %v61_v18 }
  0x1b   :  { %70 = vst [vmem:[#allocation5 + $0x20] sm:$0xff] %v68_v20 }
  0x1c   :  { %77 = vst [vmem:[#allocation5 + $0x28] sm:$0xff] %v75_v22 }
  0x1d   :  { %84 = vst [vmem:[#allocation5 + $0x30] sm:$0xff] %v82_v23 }
  0x1e   :  { %91 = vst [vmem:[#allocation5 + $0x38] sm:$0xff] %v89_v24 }
  0x1f   :  { %104 = dma.vmem_to_hbm [thread:$0]  %s97_s18, 1024, %s99_s21, [#allocation6], %s164_s22, %s164_s22, %s165_s23  }
  0x20   :  { %160 = dma.done.wait [#allocation6], 1024  }
  0x21   :  { %161 = vsyncadd [#allocation6], 4294966272 }
  0x22   :  { %109 = vsyncpa [#allocation6], 1 }

</bundles_post_ra>
